<compile_context>
chip_gen: v5e
topology: v5e:2x2
jax: 0.10.0
libtpu: 0.0.40
codegen_flags: <defaults>
</compile_context>

<pallas_src>
import functools

import jax
import jax.numpy as jnp
from jax.experimental import pallas as pl
from jax.experimental.pallas import tpu as pltpu

LANE = 128   # TPU lane width
SUB = 8      # f32 sublane quantum


def _round_up(n, m):
    return ((n + m - 1) // m) * m


def policy_kernel(x_ref, w1_ref, b1_ref, w2_ref, b2_ref, wh_ref, bh_ref,
                  out_ref, *, out_size):
    """One batch tile: 3 matmuls (heads fused) + masked-softmax epilogue.

    out_ref is a narrow lane block (TB, round_up(out_size + 1, 8)):
      lanes [0, out_size)        -> softmax(action logits)
      lane   out_size            -> state value
      remaining pad lanes        -> zero
    """
    x = x_ref[...]

    # affine1 + ReLU  (MXU matmul, f32 accumulate)
    h1 = jnp.dot(x, w1_ref[...], preferred_element_type=jnp.float32) + b1_ref[...]
    h1 = jnp.maximum(h1, 0.0)

    # affine2 + ReLU
    h2 = jnp.dot(h1, w2_ref[...], preferred_element_type=jnp.float32) + b2_ref[...]
    h2 = jnp.maximum(h2, 0.0)

    # fused action + value heads -> single narrow matmul
    head = jnp.dot(h2, wh_ref[...], preferred_element_type=jnp.float32) + bh_ref[...]

    lane = jax.lax.broadcasted_iota(jnp.int32, head.shape, 1)
    is_prob = lane < out_size
    is_val = lane == out_size

    # numerically stable softmax over the action lanes only (exact divide so
    # probabilities sum to 1 for downstream sampling)
    masked_logits = jnp.where(is_prob, head, -jnp.inf)
    m = jnp.max(masked_logits, axis=-1, keepdims=True)
    e = jnp.where(is_prob, jnp.exp(head - m), 0.0)
    probs = e / jnp.sum(e, axis=-1, keepdims=True)

    out_ref[...] = jnp.where(is_prob, probs, jnp.where(is_val, head, 0.0))


def policy_forward(x, params, output_size, *, batch_tile=2048):
    """x: (B, input_size). params: padded kernel params from init_params."""
    B, in_size = x.shape
    in_p = params["w1"].shape[0]
    out_lanes = params["wh"].shape[1]
    assert in_size <= in_p and output_size + 1 <= out_lanes

    # batch tile: multiple of 8 sublanes, bounded by the (sublane-padded) batch
    B8 = _round_up(B, SUB)
    TB = min(_round_up(batch_tile, SUB), B8)
    # keep >= 2 grid steps whenever the batch allows so both v7x TCs get work
    if B8 > SUB:
        TB = min(TB, _round_up(-(-B8 // 2), SUB))
    Bp = _round_up(B, TB)

    # only the batch dim (and the tiny 8-lane feature pad) is materialized;
    # the f32 cast folds into this single pad write
    if Bp == B and in_p == in_size and x.dtype == jnp.float32:
        x_p = x
    else:
        x_p = jnp.zeros((Bp, in_p), jnp.float32).at[:B, :in_size].set(
            x.astype(jnp.float32))

    kernel = functools.partial(policy_kernel, out_size=output_size)

    out = pl.pallas_call(
        kernel,
        out_shape=jax.ShapeDtypeStruct((Bp, out_lanes), jnp.float32),
        grid=(Bp // TB,),
        in_specs=[
            pl.BlockSpec((TB, in_p), lambda i: (i, 0)),
            pl.BlockSpec(params["w1"].shape, lambda i: (0, 0)),
            pl.BlockSpec(params["b1"].shape, lambda i: (0, 0)),
            pl.BlockSpec(params["w2"].shape, lambda i: (0, 0)),
            pl.BlockSpec(params["b2"].shape, lambda i: (0, 0)),
            pl.BlockSpec(params["wh"].shape, lambda i: (0, 0)),
            pl.BlockSpec(params["bh"].shape, lambda i: (0, 0)),
        ],
        out_specs=pl.BlockSpec((TB, out_lanes), lambda i: (i, 0)),
        compiler_params=pltpu.CompilerParams(
            dimension_semantics=("parallel",)),
    )(x_p, params["w1"], params["b1"], params["w2"], params["b2"],
      params["wh"], params["bh"])

    action_prob = out[:B, :output_size]
    state_values = out[:B, output_size:output_size + 1]
    return action_prob, state_values


def init_params(key, input_size, output_size, h1=32, h2=64):
    """PyTorch-Linear-style init, then packed / padded for the kernel.

    Kernel params: input features rounded to 8 (sublane quantum), hidden dims
    lane-padded to 128, fused action+value head padded to round_up(out+1, 8)
    lanes with the value head living in lane `output_size`.
    """

    def linear(key, fan_in, fan_out):
        kw, kb = jax.random.split(key)
        bound = 1.0 / jnp.sqrt(jnp.float32(fan_in))
        w = jax.random.uniform(kw, (fan_in, fan_out), jnp.float32, -bound, bound)
        b = jax.random.uniform(kb, (fan_out,), jnp.float32, -bound, bound)
        return w, b

    k1, k2, k3, k4 = jax.random.split(key, 4)
    w1, b1 = linear(k1, input_size, h1)
    w2, b2 = linear(k2, h1, h2)
    wa, ba = linear(k3, h2, output_size)
    wv, bv = linear(k4, h2, 1)

    raw = {"w1": w1, "b1": b1, "w2": w2, "b2": b2,
           "wa": wa, "ba": ba, "wv": wv, "bv": bv}

    in_p = _round_up(input_size, SUB)          # narrow input: no 128-lane pad
    h1_p = _round_up(h1, LANE)
    h2_p = _round_up(h2, LANE)
    out_p = _round_up(output_size + 1, SUB)    # narrow fused-head output

    w1_p = jnp.zeros((in_p, h1_p), jnp.float32).at[:input_size, :h1].set(w1)
    b1_p = jnp.zeros((1, h1_p), jnp.float32).at[0, :h1].set(b1)
    w2_p = jnp.zeros((h1_p, h2_p), jnp.float32).at[:h1, :h2].set(w2)
    b2_p = jnp.zeros((1, h2_p), jnp.float32).at[0, :h2].set(b2)

    # fused heads: lanes [0, out) = action head, lane out = value head
    wh_p = jnp.zeros((h2_p, out_p), jnp.float32)
    wh_p = wh_p.at[:h2, :output_size].set(wa)
    wh_p = wh_p.at[:h2, output_size:output_size + 1].set(wv)
    bh_p = jnp.zeros((1, out_p), jnp.float32).at[0, :output_size].set(ba)
    bh_p = bh_p.at[0, output_size].set(bv[0])

    kernel_params = {"w1": w1_p, "b1": b1_p, "w2": w2_p, "b2": b2_p,
                     "wh": wh_p, "bh": bh_p}
    return kernel_params, raw


if __name__ == "__main__":
    key = jax.random.PRNGKey(0)
    k_x, k_p = jax.random.split(key)

    batch = 2
    input_size = 4
    output_size = 4

    x = jax.random.normal(k_x, (batch, input_size), jnp.float32)
    params, raw = init_params(k_p, input_size, output_size)

    action_prob, state_values = policy_forward(x, params, output_size)
    jax.block_until_ready((action_prob, state_values))

    # sanity check against plain-JAX reference (unpadded weights, same default
    # matmul precision on TPU)
    h1 = jnp.maximum(x @ raw["w1"] + raw["b1"], 0.0)
    h2 = jnp.maximum(h1 @ raw["w2"] + raw["b2"], 0.0)
    ref_prob = jax.nn.softmax(h2 @ raw["wa"] + raw["ba"], axis=-1)
    ref_val = h2 @ raw["wv"] + raw["bv"]

    assert action_prob.shape == (batch, output_size)
    assert state_values.shape == (batch, 1)
    assert jnp.allclose(action_prob, ref_prob, atol=1e-4, rtol=1e-4)
    assert jnp.allclose(state_values, ref_val, atol=1e-4, rtol=1e-4)

    print("KERNEL_OK")
</pallas_src>

<mosaic_0001>
module attributes {stable_mosaic.version = 11 : i64} {
  func.func @policy_kernel(%arg0: i32, %arg1: memref<8x8xf32, #tpu.memory_space<vmem>>, %arg2: memref<8x128xf32, #tpu.memory_space<vmem>>, %arg3: memref<1x128xf32, #tpu.memory_space<vmem>>, %arg4: memref<128x128xf32, #tpu.memory_space<vmem>>, %arg5: memref<1x128xf32, #tpu.memory_space<vmem>>, %arg6: memref<128x8xf32, #tpu.memory_space<vmem>>, %arg7: memref<1x8xf32, #tpu.memory_space<vmem>>, %arg8: memref<8x8xf32, #tpu.memory_space<vmem>>) attributes {dimension_semantics = [#tpu.dimension_semantics<parallel>], iteration_bounds = array<i64: 1>, scalar_prefetch = 0 : i64, scratch_operands = 0 : i64, tpu.core_type = #tpu.core_type<tc>, window_params = [{transform_indices = @transform_0, window_bounds = array<i64: 8, 8>}, {pipeline_mode = #tpu.pipeline_mode<synchronous>, transform_indices = @transform_1, window_bounds = array<i64: 8, 128>}, {pipeline_mode = #tpu.pipeline_mode<synchronous>, transform_indices = @transform_2, window_bounds = array<i64: 1, 128>}, {pipeline_mode = #tpu.pipeline_mode<synchronous>, transform_indices = @transform_3, window_bounds = array<i64: 128, 128>}, {pipeline_mode = #tpu.pipeline_mode<synchronous>, transform_indices = @transform_4, window_bounds = array<i64: 1, 128>}, {pipeline_mode = #tpu.pipeline_mode<synchronous>, transform_indices = @transform_5, window_bounds = array<i64: 128, 8>}, {pipeline_mode = #tpu.pipeline_mode<synchronous>, transform_indices = @transform_6, window_bounds = array<i64: 1, 8>}, {transform_indices = @transform_7, window_bounds = array<i64: 8, 8>}]} {
    %c0 = arith.constant 0 : index
    %c0_0 = arith.constant 0 : index
    %0 = vector.load %arg1[%c0, %c0_0] : memref<8x8xf32, #tpu.memory_space<vmem>>, vector<8x8xf32>
    %c0_1 = arith.constant 0 : index
    %c0_2 = arith.constant 0 : index
    %1 = vector.load %arg2[%c0_1, %c0_2] : memref<8x128xf32, #tpu.memory_space<vmem>>, vector<8x128xf32>
    %cst = arith.constant dense<0.000000e+00> : vector<8x128xf32>
    %2 = tpu.matmul %0, %1, %cst {dimension_numbers = #tpu.dot_dimension_numbers<[1], [0], [0], [1], [0, 0, 1, 1], [], []>} : vector<8x8xf32>, vector<8x128xf32>, vector<8x128xf32> -> vector<8x128xf32>
    %c0_3 = arith.constant 0 : index
    %c0_4 = arith.constant 0 : index
    %3 = vector.load %arg3[%c0_3, %c0_4] : memref<1x128xf32, #tpu.memory_space<vmem>>, vector<1x128xf32>
    %4 = vector.broadcast %3 : vector<1x128xf32> to vector<8x128xf32>
    %5 = arith.addf %2, %4 : vector<8x128xf32>
    %cst_5 = arith.constant 0.000000e+00 : f32
    %6 = vector.broadcast %cst_5 : f32 to vector<8x128xf32>
    %7 = arith.maximumf %5, %6 : vector<8x128xf32>
    %c0_6 = arith.constant 0 : index
    %c0_7 = arith.constant 0 : index
    %8 = vector.load %arg4[%c0_6, %c0_7] : memref<128x128xf32, #tpu.memory_space<vmem>>, vector<128x128xf32>
    %cst_8 = arith.constant dense<0.000000e+00> : vector<8x128xf32>
    %9 = tpu.matmul %7, %8, %cst_8 {dimension_numbers = #tpu.dot_dimension_numbers<[1], [0], [0], [1], [0, 0, 1, 1], [], []>} : vector<8x128xf32>, vector<128x128xf32>, vector<8x128xf32> -> vector<8x128xf32>
    %c0_9 = arith.constant 0 : index
    %c0_10 = arith.constant 0 : index
    %10 = vector.load %arg5[%c0_9, %c0_10] : memref<1x128xf32, #tpu.memory_space<vmem>>, vector<1x128xf32>
    %11 = vector.broadcast %10 : vector<1x128xf32> to vector<8x128xf32>
    %12 = arith.addf %9, %11 : vector<8x128xf32>
    %cst_11 = arith.constant 0.000000e+00 : f32
    %13 = vector.broadcast %cst_11 : f32 to vector<8x128xf32>
    %14 = arith.maximumf %12, %13 : vector<8x128xf32>
    %c0_12 = arith.constant 0 : index
    %c0_13 = arith.constant 0 : index
    %15 = vector.load %arg6[%c0_12, %c0_13] : memref<128x8xf32, #tpu.memory_space<vmem>>, vector<128x8xf32>
    %cst_14 = arith.constant dense<0.000000e+00> : vector<8x8xf32>
    %16 = tpu.matmul %14, %15, %cst_14 {dimension_numbers = #tpu.dot_dimension_numbers<[1], [0], [0], [1], [0, 0, 1, 1], [], []>} : vector<8x128xf32>, vector<128x8xf32>, vector<8x8xf32> -> vector<8x8xf32>
    %c0_15 = arith.constant 0 : index
    %c0_16 = arith.constant 0 : index
    %17 = vector.load %arg7[%c0_15, %c0_16] : memref<1x8xf32, #tpu.memory_space<vmem>>, vector<1x8xf32>
    %18 = vector.broadcast %17 : vector<1x8xf32> to vector<8x8xf32>
    %19 = arith.addf %16, %18 : vector<8x8xf32>
    %20 = tpu.iota {dimensions = array<i32: 1>} : vector<8x8xi32>
    %c4_i32 = arith.constant 4 : i32
    %21 = vector.broadcast %c4_i32 : i32 to vector<8x8xi32>
    %22 = arith.cmpi slt, %20, %21 : vector<8x8xi32>
    %c4_i32_17 = arith.constant 4 : i32
    %23 = vector.broadcast %c4_i32_17 : i32 to vector<8x8xi32>
    %24 = arith.cmpi eq, %20, %23 : vector<8x8xi32>
    %cst_18 = arith.constant 0xFF800000 : f32
    %25 = vector.broadcast %cst_18 : f32 to vector<8x8xf32>
    %26 = arith.select %22, %19, %25 : vector<8x8xi1>, vector<8x8xf32>
    %cst_19 = arith.constant dense<0xFF800000> : vector<8xf32>
    %27 = vector.multi_reduction <maximumf>, %26, %cst_19 [1] : vector<8x8xf32> to vector<8xf32>
    %28 = vector.shape_cast %27 : vector<8xf32> to vector<8x1xf32>
    %29 = vector.broadcast %28 : vector<8x1xf32> to vector<8x8xf32>
    %30 = arith.subf %19, %29 : vector<8x8xf32>
    %31 = math.exp %30 : vector<8x8xf32>
    %cst_20 = arith.constant 0.000000e+00 : f32
    %32 = vector.broadcast %cst_20 : f32 to vector<8x8xf32>
    %33 = arith.select %22, %31, %32 : vector<8x8xi1>, vector<8x8xf32>
    %cst_21 = arith.constant dense<0.000000e+00> : vector<8xf32>
    %34 = vector.multi_reduction <add>, %33, %cst_21 [1] : vector<8x8xf32> to vector<8xf32>
    %35 = vector.shape_cast %34 : vector<8xf32> to vector<8x1xf32>
    %36 = vector.broadcast %35 : vector<8x1xf32> to vector<8x8xf32>
    %37 = arith.divf %33, %36 : vector<8x8xf32>
    %cst_22 = arith.constant 0.000000e+00 : f32
    %38 = vector.broadcast %cst_22 : f32 to vector<8x8xf32>
    %39 = arith.select %24, %19, %38 : vector<8x8xi1>, vector<8x8xf32>
    %40 = arith.select %22, %37, %39 : vector<8x8xi1>, vector<8x8xf32>
    %c0_23 = arith.constant 0 : index
    %c0_24 = arith.constant 0 : index
    %41 = vector.load %arg8[%c0_23, %c0_24] : memref<8x8xf32, #tpu.memory_space<vmem>>, vector<8x8xf32>
    tpu.vector_store %arg8[%c0_23, %c0_24], %40 {strides = array<i32>} : memref<8x8xf32, #tpu.memory_space<vmem>>, vector<8x8xf32>,
    return
  }
  func.func @transform_0(%arg0: i32) -> (i32, i32) {
    %c0_i32 = arith.constant 0 : i32
    %c0_i32_0 = arith.constant 0 : i32
    return %arg0, %c0_i32 : i32, i32
  }
  func.func @transform_1(%arg0: i32) -> (i32, i32) {
    %c0_i32 = arith.constant 0 : i32
    %c0_i32_0 = arith.constant 0 : i32
    %c0_i32_1 = arith.constant 0 : i32
    return %c0_i32, %c0_i32_0 : i32, i32
  }
  func.func @transform_2(%arg0: i32) -> (i32, i32) {
    %c0_i32 = arith.constant 0 : i32
    %c0_i32_0 = arith.constant 0 : i32
    %c0_i32_1 = arith.constant 0 : i32
    return %c0_i32, %c0_i32_0 : i32, i32
  }
  func.func @transform_3(%arg0: i32) -> (i32, i32) {
    %c0_i32 = arith.constant 0 : i32
    %c0_i32_0 = arith.constant 0 : i32
    %c0_i32_1 = arith.constant 0 : i32
    return %c0_i32, %c0_i32_0 : i32, i32
  }
  func.func @transform_4(%arg0: i32) -> (i32, i32) {
    %c0_i32 = arith.constant 0 : i32
    %c0_i32_0 = arith.constant 0 : i32
    %c0_i32_1 = arith.constant 0 : i32
    return %c0_i32, %c0_i32_0 : i32, i32
  }
  func.func @transform_5(%arg0: i32) -> (i32, i32) {
    %c0_i32 = arith.constant 0 : i32
    %c0_i32_0 = arith.constant 0 : i32
    %c0_i32_1 = arith.constant 0 : i32
    return %c0_i32, %c0_i32_0 : i32, i32
  }
  func.func @transform_6(%arg0: i32) -> (i32, i32) {
    %c0_i32 = arith.constant 0 : i32
    %c0_i32_0 = arith.constant 0 : i32
    %c0_i32_1 = arith.constant 0 : i32
    return %c0_i32, %c0_i32_0 : i32, i32
  }
  func.func @transform_7(%arg0: i32) -> (i32, i32) {
    %c0_i32 = arith.constant 0 : i32
    %c0_i32_0 = arith.constant 0 : i32
    return %arg0, %c0_i32 : i32, i32
  }
}

</mosaic_0001>

<bundles_post_ra>
// kernel: tpu_custom_call.1
= control target key start
LH: loop header
LB: loop body
LE: loop exit
PB: predicated region body
PF: predicated region fallthrough
CT: control target
= control target key end

     0   :  { %12 = vsyncpa [#allocation3], 0  ;;  %s428_s0 = inlined_call_operand.vmem [shape: f32[8,8], index: 0, kind: input, shape index: {}]   ;;  %s429_s1 = inlined_call_operand.hbm [shape: f32[8,128], index: 1, kind: input, shape index: {}]   ;;  %s430_s2 = inlined_call_operand.vmem [shape: f32[1,128], index: 2, kind: input, shape index: {}]   ;;  %s431_s3 = inlined_call_operand.vmem [shape: f32[128,128], index: 3, kind: input, shape index: {}]   ;;  %s432_s4 = inlined_call_operand.vmem [shape: f32[1,128], index: 4, kind: input, shape index: {}]   ;;  %s433_s5 = inlined_call_operand.vmem [shape: f32[128,8], index: 5, kind: input, shape index: {}]   ;;  %s434_s6 = inlined_call_operand.vmem [shape: f32[1,8], index: 6, kind: input, shape index: {}]   ;;  %s435_s7 = inlined_call_operand.hbm [shape: f32[8,8], index: 7, kind: output, shape index: {}]  }
   0x1   :  { %13 = vsyncpa [#allocation4], 0  ;;  %s21_s26 = sshll.u32 %s429_s1, 4  ;;  %s265_s27 = smov [#allocation2]   ;;  %s22_s26 = int_to_ptr.hbm [resolvable:$true] %s21_s26 }
   0x2   :  { %s23_s28 = sshll.u32 %s265_s27, 4  ;;  %s24_s28 = int_to_ptr.vmem [resolvable:$true] %s23_s28 }
   0x3   :  { %26 = dma.hbm_to_vmem [thread:$0]  %s22_s26, 128, %s24_s28, [#allocation3]  }
   0x4   :  { %261 = dma.done.wait [#allocation3], 128  }
   0x5   :  { %262 = vsyncadd [#allocation3], 4294967168  ;;  %vm47_vm0 = vcmask 64512   ;;  %v42_v0 = vld [vmem:[#allocation2] sm:$0xff]  ;;  %v87_v2 = vld [vmem:[%s431_s3 + $0x78] sm:$0xff]  ;;  %v153_v42 = vlaneseq  ;;  %s193_s24 = sshll.u32 %s435_s7, 4  ;;  %s194_s24 = int_to_ptr.hbm [resolvable:$true] %s193_s24 }
   0x6   :  { %v41_v1 = vld [vmem:[%s428_s0] sm:$0xff]  ;;  %66 = vmatpush.msra.mxu0 %v42_v0  ;;  %92 = vmatpush.msra.mxu1 %v87_v2  ;;  %v86_v3 = vld [vmem:[%s431_s3 + $0x70] sm:$0xff]  ;;  %v85_v4 = vld [vmem:[%s431_s3 + $0x68] sm:$0xff] }
   0x7   :  { %203 = vmatmul.msk.f32.vlgmr.msra.gmra.mxu0 %vm47_vm0, %v41_v1  ;;  %v84_v5 = vld [vmem:[%s431_s3 + $0x60] sm:$0xff]  ;;  %v83_v6 = vld [vmem:[%s431_s3 + $0x58] sm:$0xff]  ;;  %v82_v7 = vld [vmem:[%s431_s3 + $0x50] sm:$0xff]  ;;  %v154_v43 = vand.u32 127, %v153_v42 }
   0x8   :  { %93 = vmatpush.msra.mxu1 %v86_v3  ;;  %v81_v8 = vld [vmem:[%s431_s3 + $0x48] sm:$0xff]  ;;  %v80_v9 = vld [vmem:[%s431_s3 + $0x40] sm:$0xff]  ;;  %v79_v10 = vld [vmem:[%s431_s3 + $0x38] sm:$0xff] }
   0x9   :  { %v78_v11 = vld [vmem:[%s431_s3 + $0x30] sm:$0xff]  ;;  %v77_v12 = vld [vmem:[%s431_s3 + $0x28] sm:$0xff]  ;;  %v76_v13 = vld [vmem:[%s431_s3 + $0x20] sm:$0xff]  ;;  %vm155_vm1 = vcmp.lt.s32.totalorder %v154_v43, 4  ;;  %vm156_vm5 = vcmp.eq.s32.totalorder %v154_v43, 4 }
   0xa   :  { %94 = vmatpush.msra.mxu1 %v85_v4  ;;  %v75_v14 = vld [vmem:[%s431_s3 + $0x18] sm:$0xff]  ;;  %v74_v15 = vld [vmem:[%s431_s3 + $0x10] sm:$0xff]  ;;  %v73_v16 = vld [vmem:[%s431_s3 + $0x8] sm:$0xff] }
   0xb   :  { %v72_v17 = vld [vmem:[%s431_s3] sm:$0xff]  ;;  %v128_v18 = vld [vmem:[%s433_s5 + $0x78] sm:$0xff]  ;;  %v127_v19 = vld [vmem:[%s433_s5 + $0x70] sm:$0xff] }
   0xc   :  { %95 = vmatpush.msra.mxu1 %v84_v5  ;;  %133 = vmatpush.msra.mxu2 %v128_v18  ;;  %v126_v20 = vld [vmem:[%s433_s5 + $0x68] sm:$0xff]  ;;  %v125_v21 = vld [vmem:[%s433_s5 + $0x60] sm:$0xff]  ;;  %v124_v22 = vld [vmem:[%s433_s5 + $0x58] sm:$0xff] }
   0xd   :  { %v123_v23 = vld [vmem:[%s433_s5 + $0x50] sm:$0xff]  ;;  %v122_v24 = vld [vmem:[%s433_s5 + $0x48] sm:$0xff]  ;;  %v121_v25 = vld [vmem:[%s433_s5 + $0x40] sm:$0xff] }
   0xe   :  { %96 = vmatpush.msra.mxu1 %v83_v6  ;;  %134 = vmatpush.msra.mxu2 %v127_v19  ;;  %v120_v26 = vld [vmem:[%s433_s5 + $0x38] sm:$0xff]  ;;  %v119_v27 = vld [vmem:[%s433_s5 + $0x30] sm:$0xff]  ;;  %v118_v28 = vld [vmem:[%s433_s5 + $0x28] sm:$0xff] }
   0xf   :  { %v117_v29 = vld [vmem:[%s433_s5 + $0x20] sm:$0xff]  ;;  %v116_v30 = vld [vmem:[%s433_s5 + $0x18] sm:$0xff]  ;;  %v115_v35 = vld [vmem:[%s433_s5 + $0x10] sm:$0xff] }
  0x10   :  { %97 = vmatpush.msra.mxu1 %v82_v7  ;;  %135 = vmatpush.msra.mxu2 %v126_v20  ;;  %v206_v31 = vld [vmem:[%s430_s2] ss:$0 sm:$0xff]  ;;  %v114_v36 = vld [vmem:[%s433_s5 + $0x8] sm:$0xff] }
  0x11   :  { %v113_v37 = vld [vmem:[%s433_s5] sm:$0xff] }
  0x12   :  { %98 = vmatpush.msra.mxu1 %v81_v8  ;;  %136 = vmatpush.msra.mxu2 %v125_v21  ;;  %v207_v38 = vld [vmem:[%s432_s4] ss:$0 sm:$0xff]  ;;  %s266_s4 = smov [#allocation5]  }
  0x13   :  { %v208_v44 = vld [vmem:[%s434_s6] ss:$0 sm:$0xff]  ;;  %s191_s5 = sshll.u32 %s266_s4, 4  ;;  %s192_s5 = int_to_ptr.vmem [resolvable:$true] %s191_s5 }
  0x14   :  { %99 = vmatpush.msra.mxu1 %v80_v9  ;;  %137 = vmatpush.msra.mxu2 %v124_v22 }
  0x16   :  { %100 = vmatpush.msra.mxu1 %v79_v10  ;;  %138 = vmatpush.msra.mxu2 %v123_v23 }
  0x18   :  { %101 = vmatpush.msra.mxu1 %v78_v11  ;;  %139 = vmatpush.msra.mxu2 %v122_v24 }
  0x1a   :  { %102 = vmatpush.msra.mxu1 %v77_v12  ;;  %140 = vmatpush.msra.mxu2 %v121_v25 }
  0x1c   :  { %103 = vmatpush.msra.mxu1 %v76_v13  ;;  %141 = vmatpush.msra.mxu2 %v120_v26 }
  0x1e   :  { %104 = vmatpush.msra.mxu1 %v75_v14  ;;  %142 = vmatpush.msra.mxu2 %v119_v27 }
  0x20   :  { %105 = vmatpush.msra.mxu1 %v74_v15  ;;  %143 = vmatpush.msra.mxu2 %v118_v28 }
  0x22   :  { %106 = vmatpush.msra.mxu1 %v73_v16  ;;  %144 = vmatpush.msra.mxu2 %v117_v29 }
  0x24   :  { %107 = vmatpush.msra.mxu1 %v72_v17  ;;  %145 = vmatpush.msra.mxu2 %v116_v30 }
  0x26   :  { %146 = vmatpush.msra.mxu2 %v115_v35 }
  0x28   :  { %147 = vmatpush.msra.mxu2 %v114_v36 }
  0x2a   :  { %148 = vmatpush.msra.mxu2 %v113_v37 }
  0x84   :  { %v68_v32 = vpop.f32.mrf.mxu0 }
  0x85   :  { %v69_v33 = vadd.f32 %v206_v31, %v68_v32 }
  0x87   :  { %v71_v34 = vmax.f32 %v69_v33, 0.0 }
  0x89   :  { %108 = vmatmul.f32.vlgmr.msra.gmra.mxu1 %v71_v34 }
 0x106   :  { %v109_v39 = vpop.f32.mrf.mxu1 }
 0x107   :  { %v110_v40 = vadd.f32 %v207_v38, %v109_v39 }
 0x109   :  { %v112_v41 = vmax.f32 %v110_v40, 0.0 }
 0x10b   :  { %149 = vmatmul.f32.vlgmr.msra.gmra.mxu2 %v112_v41 }
 0x18e   :  { %v150_v45 = vpop.f32.mrf.mxu2 }
 0x18f   :  { %v151_v46 = vadd.f32 %v208_v44, %v150_v45 }
 0x191   :  { %v157_v47 = vsel %vm155_vm1, %v151_v46, -inf  ;;  %v183_v3 = vsel %vm156_vm5, %v151_v46, 0.0 }
 0x192   :  { %v158_v48 = vsel %vm47_vm0, %v157_v47, -inf }
 0x193   :  { %159 = vmax.xlane.f32.xlu0 %v158_v48 }
 0x206   :  { %v160_v49 = vpop.xlane.xlu0 %159 }
 0x207   :  { %v161_v50 = vsub.f32 %v151_v46, %v160_v49 }
 0x209   :  { %v162_v51 = vmul.f32 1.442695, %v161_v50 }
 0x20b   :  { %209 = vpow2.f32 %v162_v51 }
 0x211   :  { %v210_v52 = vpop.eup %209 }
 0x212   :  { %v164_v53 = vsel %vm155_vm1, %v210_v52, 0.0 }
 0x213   :  { %v165_v54 = vsel %vm47_vm0, %v164_v53, 0.0 }
 0x214   :  { %166 = vadd.xlane.f32.xlu0 %v165_v54 }
 0x287   :  { %v167_v55 = vpop.xlane.xlu0 %166 }
 0x288   :  { %211 = vrcp.f32 %v167_v55  ;;  %v179_v59 = vand.u32 2147483648, %v167_v55  ;;  %v177_v61 = vand.u32 2147483647, %v167_v55  ;;  %vm173_vm3 = vweird.f32 %v167_v55 }
 0x28a   :  { %v180_v63 = vor.u32 1.1754944e-38, %v179_v59  ;;  %vm178_vm6 = vcmp.eq.f32.partialorder %v177_v61, 8.507059e+37 }
 0x28e   :  { %v212_v56 = vpop.eup %211 }
 0x28f   :  { %v169_v57 = vmul.f32 %v212_v56, %v167_v55  ;;  %vm174_vm2 = vweird.f32 %v212_v56 }
 0x290   :  { %vm175_vm4 = vmor %vm173_vm3, %vm174_vm2 }
 0x291   :  { %v170_v58 = vsub.f32 1.0, %v169_v57 }
 0x293   :  { %v171_v60 = vmul.f32 %v212_v56, %v170_v58 }
 0x295   :  { %v172_v62 = vadd.f32 %v212_v56, %v171_v60 }
 0x297   :  { %v176_v0 = vsel %vm175_vm4, %v212_v56, %v172_v62 }
 0x298   :  { %v181_v1 = vsel %vm178_vm6, %v180_v63, %v176_v0 }
 0x299   :  { %v182_v2 = vmul.f32 %v181_v1, %v164_v53 }
 0x29b   :  { %v184_v4 = vsel %vm155_vm1, %v182_v2, %v183_v3 }
 0x29c   :  { %185 = vst.msk [vmem:[#allocation5] sm:$0xff] %vm47_vm0, %v184_v4 }
 0x29d   :  { %196 = dma.vmem_to_hbm [thread:$0]  %s192_s5, 128, %s194_s24, [#allocation4]  }
 0x29e   :  { %263 = dma.done.wait [#allocation4], 128  }
 0x29f   :  { %264 = vsyncadd [#allocation4], 4294967168 }
 0x2a0   :  { %201 = vsyncpa [#allocation3], 1 }
 0x2a1   :  { %202 = vsyncpa [#allocation4], 1 }

</bundles_post_ra>
